<compile_context>
chip_gen: v7x
topology: tpu7x:2x2x1
jax: 0.10.0
libtpu: 0.0.40
codegen_flags: <defaults>
</compile_context>

<pallas_src>
import functools

import jax
import jax.numpy as jnp
from jax.experimental import pallas as pl
from jax.experimental.pallas import tpu as pltpu


def _round_up(x, m):
    return ((x + m - 1) // m) * m


def _cdiv(a, b):
    return -(-a // b)


def _tpu_defaults():
    """Per-generation tile sizes, gating dtype and scoped-VMEM limit."""
    # Conservative defaults for unknown chips.
    tm, th = 512, 256
    gate_dtype = jnp.float32
    vmem = 48 * 1024 * 1024
    two_tc = False
    try:
        kind = jax.devices()[0].device_kind.lower()
    except Exception:  # pragma: no cover - CPU / interpret fallback
        kind = ""
    if "v5 lite" in kind or "v5e" in kind or "v5litepod" in kind:
        tm, th, gate_dtype, vmem = 256, 512, jnp.float32, 96 * 1024 * 1024
    elif "v6" in kind or "trillium" in kind:
        tm, th, gate_dtype, vmem = 1024, 512, jnp.bfloat16, 100 * 1024 * 1024
    elif "v7" in kind:
        tm, th, gate_dtype, vmem = 512, 256, jnp.bfloat16, 48 * 1024 * 1024
        two_tc = True
    # Never ask for more scoped VMEM than the chip physically has.
    try:
        info = pltpu.get_tpu_info()
        cap = getattr(info, "vmem_capacity_bytes", None)
        if cap:
            vmem = min(vmem, int(cap * 0.85))
    except Exception:  # pragma: no cover
        pass
    return dict(tm=tm, th=th, gate_dtype=gate_dtype,
                vmem_limit_bytes=vmem, two_tc=two_tc)


@functools.partial(
    jax.jit,
    static_argnames=("tm", "th", "gate_dtype", "compute_dtype",
                     "vmem_limit_bytes", "two_tc"))
def _ffn_swiglu_call(x, w12p, w3p, *, tm, th, gate_dtype, compute_dtype,
                     vmem_limit_bytes, two_tc):
    orig_shape = x.shape
    orig_dtype = x.dtype
    D = x.shape[-1]
    Hp, Dp = w3p.shape

    M = 1
    for s in x.shape[:-1]:
        M *= s

    # Balanced row tiling: minimise zero-padding waste, keep the tile a
    # multiple of 16 sublanes (bf16 packing), and ensure >= 2 row tiles when
    # two TensorCores are available so the "parallel" M axis feeds both.
    n_tiles = max(1, _cdiv(M, tm))
    if two_tc and n_tiles == 1 and M >= 32:
        n_tiles = 2
    tm_eff = max(16, _round_up(_cdiv(M, n_tiles), 16))
    Mp = tm_eff * _cdiv(M, tm_eff)
    n_row_tiles = Mp // tm_eff
    n_h_tiles = Hp // th

    x2d = x.reshape(M, D)
    x2d = jnp.pad(x2d, ((0, Mp - M), (0, Dp - D))).astype(compute_dtype)

    def kernel(x_ref, w12_ref, w3_ref, o_ref):
        # x_ref:  (tm, Dp)      bf16 row tile of the flattened input
        # w12_ref:(Dp, 2*th)    fused [W1_j | W2_j] hidden slice
        # w3_ref: (th, Dp)      hidden slice of the output projection
        # o_ref:  (tm, Dp) f32  resident output block == accumulator
        j = pl.program_id(1)

        @pl.when(j == 0)
        def _():
            o_ref[...] = jnp.zeros_like(o_ref)

        # Gate + value projections in a single MXU op (f32 accumulation).
        h = jnp.dot(x_ref[...], w12_ref[...],
                    preferred_element_type=jnp.float32)
        h1 = h[:, :th].astype(gate_dtype)
        h2 = h[:, th:].astype(gate_dtype)
        # Swish(h1) * h2 on VPU/EUP (bf16 on v6e/v7x, f32 on v5e/unknown).
        gated = (h1 * jax.nn.sigmoid(h1)) * h2
        # Output projection for this hidden slice, accumulated into o_ref.
        o_ref[...] += jnp.dot(gated.astype(w3_ref.dtype), w3_ref[...],
                              preferred_element_type=jnp.float32)

    in_bytes = jnp.dtype(compute_dtype).itemsize
    cost = pl.CostEstimate(
        flops=6 * Mp * Dp * Hp,
        transcendentals=Mp * Hp,
        bytes_accessed=(Mp * Dp * in_bytes                        # x read
                        + n_row_tiles * 3 * Dp * Hp * in_bytes    # weights re-streamed per row tile
                        + Mp * Dp * 4),                           # f32 output writeback
    )

    out2d = pl.pallas_call(
        kernel,
        out_shape=jax.ShapeDtypeStruct((Mp, Dp), jnp.float32),
        grid_spec=pltpu.PrefetchScalarGridSpec(
            num_scalar_prefetch=0,
            grid=(n_row_tiles, n_h_tiles),
            in_specs=[
                pl.BlockSpec((tm_eff, Dp), lambda i, j: (i, 0)),   # x row tile
                pl.BlockSpec((Dp, 2 * th), lambda i, j: (0, j)),   # fused W1|W2 slice
                pl.BlockSpec((th, Dp), lambda i, j: (j, 0)),       # W3 slice
            ],
            out_specs=pl.BlockSpec((tm_eff, Dp), lambda i, j: (i, 0)),
        ),
        compiler_params=pltpu.CompilerParams(
            dimension_semantics=("parallel", "arbitrary"),
            vmem_limit_bytes=vmem_limit_bytes,
        ),
        cost_estimate=cost,
    )(x2d, w12p, w3p)

    return out2d[:M, :D].reshape(orig_shape).astype(orig_dtype)


def make_ffn_swiglu(w1, w2, w3, *, tm=None, th=None, gate_dtype=None,
                    vmem_limit_bytes=None, compute_dtype=jnp.bfloat16):
    """Prepare (pad + cast + fuse) weights once and return a forward closure.

    w1, w2: (D, H) gate / value projections (already transposed vs. torch's
            (out, in) storage).  w3: (H, D) output projection.
    """
    D, H = w1.shape
    assert w2.shape == (D, H) and w3.shape == (H, D)

    cfg = _tpu_defaults()
    tm = int(tm if tm is not None else cfg["tm"])
    th = int(th if th is not None else cfg["th"])
    gate_dtype = gate_dtype if gate_dtype is not None else cfg["gate_dtype"]
    vmem_limit_bytes = int(vmem_limit_bytes if vmem_limit_bytes is not None
                           else cfg["vmem_limit_bytes"])
    two_tc = bool(cfg["two_tc"])

    # Lane-aligned padded sizes.  Zero padding is numerically exact:
    # swish(0)*0 contributes nothing and padded W3 rows/columns are zero.
    Dp = _round_up(D, 128)
    th = min(th, _round_up(H, 128))
    Hp = _round_up(H, th)
    nj = Hp // th

    # Hoisted out of the forward path: pad, cast to bf16 and interleave W1/W2
    # so hidden block j of the fused weight is [W1[:, j*th:(j+1)*th] | W2[...]].
    w1p = jnp.pad(w1, ((0, Dp - D), (0, Hp - H))).astype(compute_dtype)
    w2p = jnp.pad(w2, ((0, Dp - D), (0, Hp - H))).astype(compute_dtype)
    w12p = jnp.concatenate(
        [w1p.reshape(Dp, nj, th), w2p.reshape(Dp, nj, th)], axis=-1
    ).reshape(Dp, 2 * Hp)
    w3p = jnp.pad(w3, ((0, Hp - H), (0, Dp - D))).astype(compute_dtype)
    w12p, w3p = jax.block_until_ready((w12p, w3p))

    def ffn(x):
        # TODO(synk): training-mode dropout (random mask + 1/(1-p) scale) not
        # implemented; nn.Dropout is the identity in eval()/inference.
        return _ffn_swiglu_call(
            x, w12p, w3p,
            tm=tm, th=th, gate_dtype=gate_dtype, compute_dtype=compute_dtype,
            vmem_limit_bytes=vmem_limit_bytes, two_tc=two_tc)

    return ffn


def _reference(x2d, w1, w2, w3):
    h1 = x2d @ w1
    h2 = x2d @ w2
    return (h1 * jax.nn.sigmoid(h1) * h2) @ w3


if __name__ == "__main__":
    # Shapes consistent with the module: batch=2, block_size(seq)=8,
    # embeddings_dims=32  ->  hidden_dims = int(2 * (4 * 32) / 3) = 85
    B, T, D = 2, 8, 32
    H = int(2 * (4 * D) / 3)

    key = jax.random.PRNGKey(0)
    kx, k1, k2, k3 = jax.random.split(key, 4)

    x = jax.random.normal(kx, (B, T, D), dtype=jnp.float32)

    # nn.Linear default init U(-1/sqrt(fan_in), 1/sqrt(fan_in)); weights stored
    # pre-transposed relative to torch's (out, in) convention.
    b1 = 1.0 / jnp.sqrt(D)
    b3 = 1.0 / jnp.sqrt(H)
    w1 = jax.random.uniform(k1, (D, H), jnp.float32, minval=-b1, maxval=b1)
    w2 = jax.random.uniform(k2, (D, H), jnp.float32, minval=-b1, maxval=b1)
    w3 = jax.random.uniform(k3, (H, D), jnp.float32, minval=-b3, maxval=b3)

    ffn = make_ffn_swiglu(w1, w2, w3)
    out = ffn(x)
    out = jax.block_until_ready(out)

    ref = _reference(x.reshape(B * T, D), w1, w2, w3).reshape(B, T, D)
    assert out.shape == (B, T, D), out.shape
    # bf16 operands with f32 accumulation: looser tolerance than pure f32.
    assert jnp.allclose(out, ref, atol=2e-2, rtol=2e-2), float(
        jnp.max(jnp.abs(out - ref))
    )

    print("KERNEL_OK")
</pallas_src>

<mosaic_0001>
module attributes {stable_mosaic.version = 11 : i64} {
  func.func @kernel(%arg0: i32, %arg1: i32, %arg2: memref<16x128xbf16, #tpu.memory_space<vmem>>, %arg3: memref<128x256xbf16, #tpu.memory_space<vmem>>, %arg4: memref<128x128xbf16, #tpu.memory_space<vmem>>, %arg5: memref<16x128xf32, #tpu.memory_space<vmem>>) attributes {dimension_semantics = [#tpu.dimension_semantics<parallel>, #tpu.dimension_semantics<arbitrary>], iteration_bounds = array<i64: 1, 1>, scalar_prefetch = 0 : i64, scratch_operands = 0 : i64, tpu.core_type = #tpu.core_type<tc>, window_params = [{transform_indices = @transform_0, window_bounds = array<i64: 16, 128>}, {transform_indices = @transform_1, window_bounds = array<i64: 128, 256>}, {transform_indices = @transform_2, window_bounds = array<i64: 128, 128>}, {transform_indices = @transform_3, window_bounds = array<i64: 16, 128>}]} {
    %c0_i32 = arith.constant 0 : i32
    %0 = arith.cmpi eq, %arg1, %c0_i32 : i32
    %1 = arith.extui %0 : i1 to i32
    %c0_i32_0 = arith.constant 0 : i32
    %2 = arith.cmpi ne, %1, %c0_i32_0 : i32
    scf.if %2 {
      %cst_12 = arith.constant 0.000000e+00 : f32
      %21 = vector.broadcast %cst_12 : f32 to vector<16x128xf32>
      %c0_13 = arith.constant 0 : index
      %c0_14 = arith.constant 0 : index
      %22 = vector.load %arg5[%c0_13, %c0_14] : memref<16x128xf32, #tpu.memory_space<vmem>>, vector<16x128xf32>
      tpu.vector_store %arg5[%c0_13, %c0_14], %21 {strides = array<i32>} : memref<16x128xf32, #tpu.memory_space<vmem>>, vector<16x128xf32>,
    } else {
    }
    %c0 = arith.constant 0 : index
    %c0_1 = arith.constant 0 : index
    %3 = vector.load %arg2[%c0, %c0_1] : memref<16x128xbf16, #tpu.memory_space<vmem>>, vector<16x128xbf16>
    %c0_2 = arith.constant 0 : index
    %c0_3 = arith.constant 0 : index
    %4 = vector.load %arg3[%c0_2, %c0_3] : memref<128x256xbf16, #tpu.memory_space<vmem>>, vector<128x256xbf16>
    %cst = arith.constant dense<0.000000e+00> : vector<16x256xf32>
    %5 = tpu.matmul %3, %4, %cst {dimension_numbers = #tpu.dot_dimension_numbers<[1], [0], [0], [1], [0, 0, 1, 1], [], []>} : vector<16x128xbf16>, vector<128x256xbf16>, vector<16x256xf32> -> vector<16x256xf32>
    %6 = vector.extract_strided_slice %5 {offsets = [0, 0], sizes = [16, 128], strides = [1, 1]} : vector<16x256xf32> to vector<16x128xf32>
    %7 = vector.extract_strided_slice %5 {offsets = [0, 128], sizes = [16, 128], strides = [1, 1]} : vector<16x256xf32> to vector<16x128xf32>
    %8 = arith.negf %6 : vector<16x128xf32>
    %9 = math.exp %8 : vector<16x128xf32>
    %cst_4 = arith.constant 1.000000e+00 : f32
    %10 = vector.broadcast %cst_4 : f32 to vector<16x128xf32>
    %11 = arith.addf %10, %9 : vector<16x128xf32>
    %12 = arith.divf %10, %11 : vector<16x128xf32>
    %13 = arith.mulf %6, %12 : vector<16x128xf32>
    %14 = arith.mulf %13, %7 : vector<16x128xf32>
    %c0_5 = arith.constant 0 : index
    %c0_6 = arith.constant 0 : index
    %15 = vector.load %arg5[%c0_5, %c0_6] : memref<16x128xf32, #tpu.memory_space<vmem>>, vector<16x128xf32>
    %16 = arith.truncf %14 : vector<16x128xf32> to vector<16x128xbf16>
    %c0_7 = arith.constant 0 : index
    %c0_8 = arith.constant 0 : index
    %17 = vector.load %arg4[%c0_7, %c0_8] : memref<128x128xbf16, #tpu.memory_space<vmem>>, vector<128x128xbf16>
    %cst_9 = arith.constant dense<0.000000e+00> : vector<16x128xf32>
    %18 = tpu.matmul %16, %17, %cst_9 {dimension_numbers = #tpu.dot_dimension_numbers<[1], [0], [0], [1], [0, 0, 1, 1], [], []>} : vector<16x128xbf16>, vector<128x128xbf16>, vector<16x128xf32> -> vector<16x128xf32>
    %19 = arith.addf %15, %18 : vector<16x128xf32>
    %c0_10 = arith.constant 0 : index
    %c0_11 = arith.constant 0 : index
    %20 = vector.load %arg5[%c0_10, %c0_11] : memref<16x128xf32, #tpu.memory_space<vmem>>, vector<16x128xf32>
    tpu.vector_store %arg5[%c0_10, %c0_11], %19 {strides = array<i32>} : memref<16x128xf32, #tpu.memory_space<vmem>>, vector<16x128xf32>,
    return
  }
  func.func @transform_0(%arg0: i32, %arg1: i32) -> (i32, i32) {
    %c0_i32 = arith.constant 0 : i32
    %c0_i32_0 = arith.constant 0 : i32
    return %arg0, %c0_i32 : i32, i32
  }
  func.func @transform_1(%arg0: i32, %arg1: i32) -> (i32, i32) {
    %c0_i32 = arith.constant 0 : i32
    %c0_i32_0 = arith.constant 0 : i32
    return %c0_i32, %arg1 : i32, i32
  }
  func.func @transform_2(%arg0: i32, %arg1: i32) -> (i32, i32) {
    %c0_i32 = arith.constant 0 : i32
    %c0_i32_0 = arith.constant 0 : i32
    return %arg1, %c0_i32 : i32, i32
  }
  func.func @transform_3(%arg0: i32, %arg1: i32) -> (i32, i32) {
    %c0_i32 = arith.constant 0 : i32
    %c0_i32_0 = arith.constant 0 : i32
    return %arg0, %c0_i32 : i32, i32
  }
}

</mosaic_0001>

<bundles_post_ra>
// kernel: _ffn_swiglu_call.1
= control target key start
LH: loop header
LB: loop body
LE: loop exit
PB: predicated region body
PF: predicated region fallthrough
CT: control target
= control target key end

     0   :  { %8 = vsyncpa [#allocation3], 0  ;;  %s546_s0 = inlined_call_operand.vmem [shape: bf16[16,128], index: 0, kind: input, shape index: {}]   ;;  %s547_s1 = inlined_call_operand.hbm [shape: bf16[128,256], index: 1, kind: input, shape index: {}]   ;;  %s548_s2 = inlined_call_operand.hbm [shape: bf16[128,128], index: 2, kind: input, shape index: {}]   ;;  %s549_s3 = inlined_call_operand.vmem [shape: f32[16,128], index: 3, kind: output, shape index: {}]  }
   0x1   :  { %9 = vsyncpa [#allocation5], 0  ;;  %s484_s12 = smov [#allocation2]   ;;  %s436_s16 = scalar_lea.hbm %s547_s1, 2048 }
   0x2   :  { %s17_s13 = sshll.u32 %s484_s12, 4  ;;  %p437_p0 = scmp.ne.s32.totalorder %s547_s1, %s436_s16  ;;  %s18_s13 = int_to_ptr.vmem [resolvable:$true] %s17_s13 }
   0x3   :  { %p440_p1 = scmp.lt.u32.totalorder %s436_s16, %s547_s1 }
   0x5   :  { %p442_p2 = pnand %p440_p1, %p437_p0 }
   0x7   :  { %445 = shalt.err (!%p442_p2)
}
   0x8   :  { %s446_s21 = scalar_lea.vmem %s18_s13, 2048  ;;  %p451_p4 = scmp.lt.s32.totalorder %s18_s13, %s18_s13 }
   0x9   :  { %p447_p3 = scmp.ne.s32.totalorder %s18_s13, %s446_s21  ;;  %p452_p5 = scmp.lt.s32.totalorder %s446_s21, %s446_s21 }
   0xb   :  { %p453_p6 = por %p452_p5, %p451_p4 }
   0xd   :  { %p454_p7 = pnand %p453_p6, %p447_p3 }
   0xf   :  { %457 = shalt.err (!%p454_p7)
}
  0x10   :  { %s485_s22 = smov 128   ;;  %s486_s23 = smov 8  }
  0x11   :  { %23 = dma.hbm_to_vmem [thread:$0]  %s547_s1, 2048, %s18_s13, [#allocation3], %s485_s22, %s485_s22, %s486_s23  }
  0x12   :  { %s487_s26 = smov [#allocation4]   ;;  %s458_s30 = scalar_lea.hbm %s548_s2, 1024 }
  0x13   :  { %s29_s27 = sshll.u32 %s487_s26, 4  ;;  %p459_p8 = scmp.ne.s32.totalorder %s548_s2, %s458_s30  ;;  %s30_s27 = int_to_ptr.vmem [resolvable:$true] %s29_s27 }
  0x14   :  { %p462_p9 = scmp.lt.u32.totalorder %s458_s30, %s548_s2 }
  0x16   :  { %p464_p10 = pnand %p462_p9, %p459_p8 }
  0x18   :  { %467 = shalt.err (!%p464_p10)
}
  0x19   :  { %s468_s8 = scalar_lea.vmem %s30_s27, 1024  ;;  %p473_p12 = scmp.lt.s32.totalorder %s30_s27, %s30_s27 }
  0x1a   :  { %p469_p11 = scmp.ne.s32.totalorder %s30_s27, %s468_s8  ;;  %p474_p13 = scmp.lt.s32.totalorder %s468_s8, %s468_s8 }
  0x1c   :  { %p475_p0 = por %p474_p13, %p473_p12 }
  0x1e   :  { %p476_p1 = pnand %p475_p0, %p469_p11 }
  0x20   :  { %479 = shalt.err (!%p476_p1)
}
  0x21   :  { %s488_s1 = smov 64   ;;  %s489_s9 = smov 4  }
  0x22   :  { %35 = dma.hbm_to_vmem [thread:$0]  %s548_s2, 1024, %s30_s27, [#allocation5], %s488_s1, %s488_s1, %s489_s9  }
  0x23   :  { %480 = dma.done.wait [#allocation3], 2048  }
  0x24   :  { %481 = vsyncadd [#allocation3], 4294965248 }
  0x25   :  { %482 = dma.done.wait [#allocation5], 1024  }
  0x26   :  { %483 = vsyncadd [#allocation5], 4294966272  ;;  %v490_v0 = vmov 0   ;;  %v395_v1 = vld [vmem:[#allocation2 + $0x4] ss:$8 sps:$4 sm:$0xff]   ;;  %v491_v19 = vmov 0.0  }
  0x27   :  { %185 = vmatprep.mubr.bf16.mxu0 %v490_v0  ;;  %v397_v2 = vld [vmem:[#allocation2] ss:$8 sps:$4 sm:$0xff]   ;;  %153 = vmatprep.subr.bf16.mxu0 %v395_v1  ;;  %v398_v3 = vld [vmem:[#allocation2 + $0x14] ss:$8 sps:$4 sm:$0xff]   ;;  %v400_v4 = vld [vmem:[#allocation2 + $0x10] ss:$8 sps:$4 sm:$0xff]  }
  0x28   :  { %154 = vmatpush1.bf16.msra.mxu0 %v397_v2  ;;  %v401_v5 = vld [vmem:[#allocation2 + $0x24] ss:$8 sps:$4 sm:$0xff]   ;;  %v403_v6 = vld [vmem:[#allocation2 + $0x20] ss:$8 sps:$4 sm:$0xff]   ;;  %v404_v7 = vld [vmem:[#allocation2 + $0x34] ss:$8 sps:$4 sm:$0xff]   ;;  %366 = vmatprep.subr.bf16.mxu1 %v491_v19 }
  0x29   :  { %155 = vmatprep.subr.bf16.mxu0 %v398_v3  ;;  %v406_v8 = vld [vmem:[#allocation2 + $0x30] ss:$8 sps:$4 sm:$0xff]   ;;  %v407_v9 = vld [vmem:[#allocation2 + $0x44] ss:$8 sps:$4 sm:$0xff]   ;;  %v409_v10 = vld [vmem:[#allocation2 + $0x40] ss:$8 sps:$4 sm:$0xff]  }
  0x2a   :  { %v410_v11 = vld [vmem:[#allocation2 + $0x54] ss:$8 sps:$4 sm:$0xff]   ;;  %v412_v12 = vld [vmem:[#allocation2 + $0x50] ss:$8 sps:$4 sm:$0xff]   ;;  %v413_v13 = vld [vmem:[#allocation2 + $0x64] ss:$8 sps:$4 sm:$0xff]  }
  0x2b   :  { %v415_v14 = vld [vmem:[#allocation2 + $0x60] ss:$8 sps:$4 sm:$0xff]   ;;  %v416_v15 = vld [vmem:[#allocation2 + $0x74] ss:$8 sps:$4 sm:$0xff]   ;;  %v418_v16 = vld [vmem:[#allocation2 + $0x70] ss:$8 sps:$4 sm:$0xff]  }
  0x2c   :  { %156 = vmatpush1.bf16.msra.mxu0 %v400_v4  ;;  %v419_v17 = vld [vmem:[%s546_s0] sm:$0xff]   ;;  %v421_v20 = vld [vmem:[#allocation4 + $0x8] sm:$0xff]   ;;  %v422_v21 = vld [vmem:[#allocation4 + $0x10] sm:$0xff]   ;;  %vm492_vm0 = vmmov 0  }
  0x2d   :  { %157 = vmatprep.subr.bf16.mxu0 %v401_v5  ;;  %v420_v18 = vld [vmem:[#allocation4] sm:$0xff]   ;;  %v423_v22 = vld [vmem:[#allocation4 + $0x18] sm:$0xff]   ;;  %v425_v24 = vld [vmem:[#allocation4 + $0x28] sm:$0xff]   ;;  %382 = vmatprep.mubr.msk.bf16.mxu1 %vm492_vm0, %v491_v19 }
  0x2e   :  { %367 = vmatpush3.bf16.msra.mxu1 %v420_v18  ;;  %v424_v23 = vld [vmem:[#allocation4 + $0x20] sm:$0xff]   ;;  %v426_v25 = vld [vmem:[#allocation4 + $0x30] sm:$0xff]   ;;  %v427_v26 = vld [vmem:[#allocation4 + $0x38] sm:$0xff]  }
  0x2f   :  { %368 = vmatprep.subr.bf16.mxu1 %v491_v19 }
  0x30   :  { %158 = vmatpush1.bf16.msra.mxu0 %v403_v6 }
  0x31   :  { %159 = vmatprep.subr.bf16.mxu0 %v404_v7 }
  0x32   :  { %369 = vmatpush3.bf16.msra.mxu1 %v421_v20 }
  0x33   :  { %370 = vmatprep.subr.bf16.mxu1 %v491_v19 }
  0x34   :  { %160 = vmatpush1.bf16.msra.mxu0 %v406_v8 }
  0x35   :  { %161 = vmatprep.subr.bf16.mxu0 %v407_v9 }
  0x36   :  { %371 = vmatpush3.bf16.msra.mxu1 %v422_v21 }
  0x37   :  { %372 = vmatprep.subr.bf16.mxu1 %v491_v19 }
  0x38   :  { %162 = vmatpush1.bf16.msra.mxu0 %v409_v10 }
  0x39   :  { %163 = vmatprep.subr.bf16.mxu0 %v410_v11 }
  0x3a   :  { %373 = vmatpush3.bf16.msra.mxu1 %v423_v22 }
  0x3b   :  { %374 = vmatprep.subr.bf16.mxu1 %v491_v19 }
  0x3c   :  { %164 = vmatpush1.bf16.msra.mxu0 %v412_v12 }
  0x3d   :  { %165 = vmatprep.subr.bf16.mxu0 %v413_v13 }
  0x3e   :  { %375 = vmatpush3.bf16.msra.mxu1 %v424_v23 }
  0x3f   :  { %376 = vmatprep.subr.bf16.mxu1 %v491_v19 }
  0x40   :  { %166 = vmatpush1.bf16.msra.mxu0 %v415_v14 }
  0x41   :  { %167 = vmatprep.subr.bf16.mxu0 %v416_v15 }
  0x42   :  { %377 = vmatpush3.bf16.msra.mxu1 %v425_v24 }
  0x43   :  { %378 = vmatprep.subr.bf16.mxu1 %v491_v19 }
  0x44   :  { %168 = vmatpush1.bf16.msra.mxu0 %v418_v16 }
  0x46   :  { %379 = vmatpush3.bf16.msra.mxu1 %v426_v25 }
  0x47   :  { %186 = vmatmul.mubr.bf16.vlgmr.msra.gmra.mrb[0].mxu0 %v419_v17  ;;  %380 = vmatprep.subr.bf16.mxu1 %v491_v19 }
  0x4a   :  { %381 = vmatpush3.bf16.msra.mxu1 %v427_v26 }
 0x11a   :  { %v187_v27 = vpop.f32.mrb[0].mxu0 }
 0x11b   :  { %v347_v28 = vmul.f32 -1.442695, %v187_v27  ;;  %v189_v29 = vpop.f32.mrb[1].mxu0 }
 0x11c   :  { %v191_v30 = vpop.f32.mrb[2].mxu0 }
 0x11d   :  { %428 = vpow2.f32 %v347_v28  ;;  %v348_v31 = vmul.f32 -1.442695, %v191_v30  ;;  %v193_v32 = vpop.f32.mrb[3].mxu0 }
 0x11f   :  { %430 = vpow2.f32 %v348_v31 }
 0x127   :  { %v429_v33 = vpop.eup %428 }
 0x128   :  { %v202_v34 = vadd.f32 1.0, %v429_v33 }
 0x129   :  { %v431_v35 = vpop.eup %430 }
 0x12a   :  { %432 = vrcp.f32 %v202_v34  ;;  %v203_v36 = vadd.f32 1.0, %v431_v35 }
 0x12c   :  { %434 = vrcp.f32 %v203_v36 }
 0x134   :  { %v433_v37 = vpop.eup %432 }
 0x135   :  { %v208_v38 = vmul.f32 %v433_v37, %v187_v27 }
 0x136   :  { %v435_v39 = vpop.eup %434 }
 0x137   :  { %v210_v40 = vmul.f32 %v208_v38, %v189_v29  ;;  %v209_v41 = vmul.f32 %v435_v39, %v191_v30 }
 0x139   :  { %v211_v42 = vmul.f32 %v209_v41, %v193_v32 }
 0x13b   :  { %v214_v43 = vpack.c.bf16 %v211_v42, %v210_v40 }
 0x13d   :  { %383 = vmatmul.mubr.bf16.vlgmr.msra.gmra.mrb[0].mxu1 %v214_v43 }
 0x210   :  { %v313_v44 = vpop.f32.mrb[0].mxu1 }
 0x211   :  { %v384_v45 = vpop.f32.mrb[1].mxu1  ;;  %322 = vst [vmem:[%s549_s3] sm:$0xff] %v313_v44 }
 0x212   :  { %v316_v46 = vpop.f32.mrb[2].mxu1 }
 0x213   :  { %v385_v47 = vpop.f32.mrb[3].mxu1  ;;  %323 = vst [vmem:[%s549_s3 + $0x8] sm:$0xff] %v316_v46 }
 0x214   :  { %328 = vsyncpa [#allocation3], 1 }
 0x215   :  { %329 = vsyncpa [#allocation5], 1 }

</bundles_post_ra>
